<compile_context>
chip_gen: v7x
topology: tpu7x:2x2x1
jax: 0.10.0
libtpu: 0.0.40
codegen_flags: <defaults>
</compile_context>

<pallas_src>
import jax
import jax.numpy as jnp
import numpy as np
from jax import lax
from jax.experimental import pallas as pl
from jax.experimental.pallas import tpu as pltpu  # noqa: F401  (TPU backend assumed)

# Problem sizes consistent with the module (in_size=4, out_size=8, stride=2, pad=1).
N, CIN, H, W = 2, 4, 16, 16
COUT = 8
KSIZE, STRIDE, PAD = 4, 2, 1
HO = (H - 1) * STRIDE - 2 * PAD + KSIZE          # 32
WO = (W - 1) * STRIDE - 2 * PAD + KSIZE          # 32
MPH = N * H * W                                   # 512 pixels per phase (= 4 * 128 lanes)
NSHIFT = 9                                        # 3x3 shared (row, col) input shifts
KCONV = NSHIFT * CIN                              # 36 conv-tap rows (de-duplicated)
KSKIP = 4 * CIN                                   # 16 bilinear-skip rows (4 phases x CIN)
KTOT = KCONV + KSKIP + 1                          # 53 (+1 ones row carries folded bias)
BN_EPS = 1e-5


# ----------------------------- Pallas kernel ------------------------------- #
def residual_t_kernel(p_ref, w_ref, o_ref):
    # Single fused MXU pass: (32, 53) @ (53, 512).  Conv taps, bilinear skip
    # and the folded bias/BN shift all live in the same operand, so there is
    # no second dot and no separate bias add.  Output (32, 512) is lane-dense
    # (512 = 4 * 128) -> unmasked full-vreg stores.
    y = jnp.dot(w_ref[...], p_ref[...], preferred_element_type=jnp.float32)
    o_ref[...] = jnp.maximum(y, 0.0).astype(o_ref.dtype)      # ReLU


# ------------------------- trace/host-time helpers -------------------------- #
def _interp_matrix(n_in, n_out):
    """Bilinear interpolation matrix, align_corners=True (UpsamplingBilinear2d)."""
    p = np.arange(n_out)
    src = p * (n_in - 1) / (n_out - 1)
    h0 = np.clip(np.floor(src).astype(np.int64), 0, n_in - 2)
    frac = (src - h0).astype(np.float32)
    Bm = np.zeros((n_out, n_in), np.float32)
    Bm[p, h0] = 1.0 - frac
    Bm[p, h0 + 1] = frac
    return Bm


def _phase_interp_rows():
    """Per-parity row/col interpolation matrices: Brows[py][r, h] = B[2r+py, h]."""
    Bm = _interp_matrix(H, HO)                               # (HO, H)
    return np.stack([Bm[0::2, :], Bm[1::2, :]], axis=0).astype(np.float32)   # (2, H, H)


def fold_params(params):
    """One-time host-side fold of all weights into a single (32, 53) matrix.

    Row index   : ph*COUT + o, ph = py*2 + px (output parity phase).
    Cols 0..35  : conv taps — shift (a, b) in 0..2 x 0..2, channel i; the 4x4
                  ConvT kernel element used by phase (py, px) at shift (a, b)
                  is (ky, kx) = (3 + py - 2a, 3 + px - 2b), valid for
                  a in {py, py+1}, b in {px, px+1} (zero otherwise).
    Cols 36..51 : bilinear-skip channel mix (block-diagonal over phases).
    Col 52      : folded ConvT bias + eval-mode BatchNorm shift (ones row).
    Eval-mode BN scale gamma/sqrt(var+eps) is folded into every column.
    """
    w1, w2, b2, gamma, beta, rmean, rvar = (np.asarray(p, np.float32) for p in params)
    W1 = w1[:, :, 0, 0]                                      # (CIN, COUT) 1x1 convT mix
    Wcomb = np.einsum('im,mokl->iokl', W1, w2)               # (CIN, COUT, 4, 4)
    scale = gamma / np.sqrt(rvar + BN_EPS)                   # (COUT,)
    bias = (b2 - rmean) * scale + beta                       # (COUT,)

    w_big = np.zeros((4 * COUT, KTOT), np.float32)
    for py in range(2):
        for px in range(2):
            ph = py * 2 + px
            rows = slice(ph * COUT, (ph + 1) * COUT)
            for a in (py, py + 1):
                for b in (px, px + 1):
                    ky = 3 + py - 2 * a
                    kx = 3 + px - 2 * b
                    cols = slice((a * 3 + b) * CIN, (a * 3 + b + 1) * CIN)
                    w_big[rows, cols] = (Wcomb[:, :, ky, kx] * scale[None, :]).T
            w_big[rows, KCONV + ph * CIN: KCONV + (ph + 1) * CIN] = \
                (W1 * scale[None, :]).T
            w_big[rows, KTOT - 1] = bias
    # TODO(synk): training-mode BatchNorm (batch statistics) is not reproduced;
    # eval-mode running stats are folded here.
    return jnp.asarray(w_big)


# ------------------------------- wrapper ----------------------------------- #
@jax.jit
def residual_layer_t(x_nchw, w_big):
    """Fused ResidualLayerT forward. Returns NCHW output (N, COUT, HO, WO)."""
    x_t = jnp.transpose(x_nchw, (1, 0, 2, 3)).astype(jnp.float32)   # (CIN, N, H, W)
    xp = jnp.pad(x_t, ((0, 0), (0, 0), (1, 1), (1, 1)))             # (CIN, N, H+2, W+2)

    # Conv-tap rows: 9 shared (row, col) shifts of the padded input, flattened
    # over (n, r, c) -> 512 lanes.  No structural zeros, ~73 KiB.
    taps = [xp[:, :, a:a + H, b:b + W].reshape(CIN, MPH)
            for a in range(3) for b in range(3)]                    # 9 x (CIN, 512)

    # Bilinear-skip rows, per output parity phase (align_corners=True).
    brows = jnp.asarray(_phase_interp_rows())                       # (2, H, H) constant
    t1 = jnp.einsum('prh,inhw->pinrw', brows, x_t,
                    precision=lax.Precision.HIGHEST)                # (2, CIN, N, H, W)
    u16 = jnp.einsum('qcw,pinrw->pqinrc', brows, t1,
                     precision=lax.Precision.HIGHEST).reshape(KSKIP, MPH)

    ones_row = jnp.ones((1, MPH), jnp.float32)                      # carries folded bias
    p_big = jnp.concatenate(taps + [u16, ones_row], axis=0)         # (53, 512), ~106 KiB

    # Single-shot kernel: no grid, everything resident in ~0.3 MiB of VMEM.
    # (If N/H/W ever scale up, add a "parallel" grid over the 512-lane axis
    #  in multiples of 128 for v7x dual-TC; at this size it would be overhead.)
    out_ph = pl.pallas_call(
        residual_t_kernel,
        out_shape=jax.ShapeDtypeStruct((4 * COUT, MPH), jnp.float32),
    )(p_big, w_big)

    # Re-interleave the 4 parity phases back into NCHW (one transpose).
    out = out_ph.reshape(2, 2, COUT, N, H, W)                 # (py, px, o, n, r, c)
    out = jnp.transpose(out, (3, 2, 4, 0, 5, 1))              # (n, o, r, py, c, px)
    return out.reshape(N, COUT, HO, WO)


# --------------------------- parameter setup -------------------------------- #
def _orthogonal(key, rows, cols):
    """Rows x cols matrix with orthonormal rows (mirrors nn.init.orthogonal_)."""
    a = jax.random.normal(key, (cols, rows), jnp.float32)
    q, _ = jnp.linalg.qr(a)                # (cols, rows), orthonormal columns
    return q.T                             # (rows, cols), orthonormal rows


def init_params(key):
    ks = jax.random.split(key, 7)
    w1 = _orthogonal(ks[0], CIN, COUT).reshape(CIN, COUT, 1, 1)          # convT1 weight
    w2 = _orthogonal(ks[1], COUT, COUT * KSIZE * KSIZE).reshape(COUT, COUT, KSIZE, KSIZE)
    b2 = 0.1 * jax.random.normal(ks[2], (COUT,), jnp.float32)            # convT2 bias
    gamma = 1.0 + 0.1 * jax.random.normal(ks[3], (COUT,), jnp.float32)
    beta = 0.1 * jax.random.normal(ks[4], (COUT,), jnp.float32)
    rmean = 0.1 * jax.random.normal(ks[5], (COUT,), jnp.float32)
    rvar = 1.0 + 0.1 * jax.random.uniform(ks[6], (COUT,), jnp.float32)
    return (w1, w2, b2, gamma, beta, rmean, rvar)


# ----------------------------- JAX reference -------------------------------- #
@jax.jit
def reference(x_nchw, params):
    w1, w2, b2, gamma, beta, rmean, rvar = params
    # ConvTranspose2d(CIN, COUT, 1, bias=False)
    y1 = jnp.einsum('nihw,io->nohw', x_nchw, w1[:, :, 0, 0],
                    precision=lax.Precision.HIGHEST)
    # ConvTranspose2d(COUT, COUT, 4, stride=2, padding=1) via dilated conv.
    w2_conv = jnp.transpose(jnp.flip(w2, axis=(2, 3)), (1, 0, 2, 3))      # OIHW
    xconv = lax.conv_general_dilated(
        y1, w2_conv, window_strides=(1, 1), padding=((2, 2), (2, 2)),
        lhs_dilation=(2, 2), dimension_numbers=('NCHW', 'OIHW', 'NCHW'),
        precision=lax.Precision.HIGHEST) + b2[None, :, None, None]
    # UpsamplingBilinear2d (align_corners=True) skip + residual add.
    Bmat = jnp.asarray(_interp_matrix(H, HO))
    y1_up = jnp.einsum('ph,nchw,qw->ncpq', Bmat, y1, Bmat,
                       precision=lax.Precision.HIGHEST)
    pre = xconv + y1_up
    # BatchNorm2d (eval) + ReLU.
    scale = gamma / jnp.sqrt(rvar + BN_EPS)
    y = (pre - rmean[None, :, None, None]) * scale[None, :, None, None] \
        + beta[None, :, None, None]
    return jnp.maximum(y, 0.0)


# --------------------------------- main ------------------------------------- #
if __name__ == "__main__":
    key = jax.random.PRNGKey(0)
    kx, kp = jax.random.split(key)
    x = jax.random.normal(kx, (N, CIN, H, W), jnp.float32)
    params = init_params(kp)
    w_big = fold_params(params)                 # one-time host-side weight fold

    out = jax.block_until_ready(residual_layer_t(x, w_big))
    ref = jax.block_until_ready(reference(x, params))

    assert out.shape == (N, COUT, HO, WO), out.shape
    np.testing.assert_allclose(np.asarray(out), np.asarray(ref),
                               rtol=1e-4, atol=1e-4)
    print("KERNEL_OK")
</pallas_src>

<mosaic_0001>
module attributes {stable_mosaic.version = 11 : i64} {
  func.func @residual_t_kernel(%arg0: memref<53x512xf32, #tpu.memory_space<vmem>>, %arg1: memref<32x53xf32, #tpu.memory_space<vmem>>, %arg2: memref<32x512xf32, #tpu.memory_space<vmem>>) attributes {dimension_semantics = [], scalar_prefetch = 0 : i64, scratch_operands = 0 : i64, tpu.core_type = #tpu.core_type<tc>} {
    %c0 = arith.constant 0 : index
    %c0_0 = arith.constant 0 : index
    %0 = vector.load %arg1[%c0, %c0_0] : memref<32x53xf32, #tpu.memory_space<vmem>>, vector<32x53xf32>
    %c0_1 = arith.constant 0 : index
    %c0_2 = arith.constant 0 : index
    %1 = vector.load %arg0[%c0_1, %c0_2] : memref<53x512xf32, #tpu.memory_space<vmem>>, vector<53x512xf32>
    %cst = arith.constant dense<0.000000e+00> : vector<32x512xf32>
    %2 = tpu.matmul %0, %1, %cst {dimension_numbers = #tpu.dot_dimension_numbers<[1], [0], [0], [1], [0, 0, 1, 1], [], []>} : vector<32x53xf32>, vector<53x512xf32>, vector<32x512xf32> -> vector<32x512xf32>
    %cst_3 = arith.constant 0.000000e+00 : f32
    %3 = vector.broadcast %cst_3 : f32 to vector<32x512xf32>
    %4 = arith.maximumf %2, %3 : vector<32x512xf32>
    %c0_4 = arith.constant 0 : index
    %c0_5 = arith.constant 0 : index
    %5 = vector.load %arg2[%c0_4, %c0_5] : memref<32x512xf32, #tpu.memory_space<vmem>>, vector<32x512xf32>
    tpu.vector_store %arg2[%c0_4, %c0_5], %4 {strides = array<i32>} : memref<32x512xf32, #tpu.memory_space<vmem>>, vector<32x512xf32>,
    return
  }
}

</mosaic_0001>

<bundles_post_ra>
// kernel: residual_layer_t.1
= control target key start
LH: loop header
LB: loop body
LE: loop exit
PB: predicated region body
PF: predicated region fallthrough
CT: control target
= control target key end

     0   :  { %v320_v3 = vmov 0.0   ;;  %vm56_vm0 = vcmask 1044480   ;;  %vm43_vm1 = vcmask 433152   ;;  %s496_s0 = inlined_call_operand.vmem [shape: f32[53,512], index: 0, kind: input, shape index: {}]   ;;  %s497_s1 = inlined_call_operand.vmem [shape: f32[32,53], index: 1, kind: input, shape index: {}]   ;;  %s498_s2 = inlined_call_operand.vmem [shape: f32[32,512], index: 2, kind: output, shape index: {}]  }
   0x1   :  { %v16_v0 = vld [vmem:[%s496_s0 + $0x8] sm:$0xff]  ;;  %v18_v2 = vld [vmem:[%s496_s0 + $0x18] sm:$0xff]  ;;  %133 = vmatprep.mubr.f32.mxu0 %v320_v3  ;;  %222 = vmatprep.mubr.f32.mxu1 %v320_v3  ;;  %v15_v6 = vld [vmem:[%s496_s0] sm:$0xff] }
   0x2   :  { %v20_v1 = vld [vmem:[%s496_s0 + $0x28] sm:$0xff]  ;;  %v22_v5 = vld [vmem:[%s496_s0 + $0x38] sm:$0xff]  ;;  %v19_v7 = vld [vmem:[%s496_s0 + $0x20] sm:$0xff] }
   0x3   :  { %v295_v4 = vpack.c.bf16 %v20_v1, %v16_v0  ;;  %v307_v8 = vpack.c.bf16 %v22_v5, %v18_v2  ;;  %v297_v9 = vpack.c.bf16 %v19_v7, %v15_v6  ;;  %v17_v10 = vld [vmem:[%s496_s0 + $0x10] sm:$0xff]  ;;  %v24_v12 = vld [vmem:[%s496_s0 + $0x48] sm:$0xff]  ;;  %v26_v15 = vld [vmem:[%s496_s0 + $0x58] sm:$0xff] }
   0x4   :  { %v21_v11 = vld [vmem:[%s496_s0 + $0x30] sm:$0xff]  ;;  %v28_v14 = vld [vmem:[%s496_s0 + $0x68] sm:$0xff]  ;;  %v30_v16 = vld [vmem:[%s496_s0 + $0x78] sm:$0xff] }
   0x5   :  { %296 = vmatprep.subr.bf16.mxu0 %v295_v4  ;;  %v309_v13 = vpack.c.bf16 %v21_v11, %v17_v10  ;;  %308 = vmatprep.subr.bf16.mxu1 %v307_v8  ;;  %v299_v17 = vpack.c.bf16 %v28_v14, %v24_v12  ;;  %v311_v18 = vpack.c.bf16 %v30_v16, %v26_v15  ;;  %v23_v19 = vld [vmem:[%s496_s0 + $0x40] sm:$0xff]  ;;  %v25_v21 = vld [vmem:[%s496_s0 + $0x50] sm:$0xff]  ;;  %v32_v24 = vld [vmem:[%s496_s0 + $0x88] sm:$0xff] }
   0x6   :  { %298 = vmatpush1.bf16.msra.mxu0 %v297_v9  ;;  %v27_v20 = vld [vmem:[%s496_s0 + $0x60] sm:$0xff]  ;;  %v29_v23 = vld [vmem:[%s496_s0 + $0x70] sm:$0xff]  ;;  %v36_v25 = vld [vmem:[%s496_s0 + $0xa8] sm:$0xff] }
   0x7   :  { %310 = vmatpush1.bf16.msra.mxu1 %v309_v13  ;;  %v301_v22 = vpack.c.bf16 %v27_v20, %v23_v19  ;;  %300 = vmatprep.subr.bf16.mxu0 %v299_v17  ;;  %v313_v26 = vpack.c.bf16 %v29_v23, %v25_v21  ;;  %v303_v27 = vpack.c.bf16 %v36_v25, %v32_v24  ;;  %v34_v28 = vld [vmem:[%s496_s0 + $0x98] sm:$0xff]  ;;  %v31_v30 = vld [vmem:[%s496_s0 + $0x80] sm:$0xff]  ;;  %v33_v33 = vld [vmem:[%s496_s0 + $0x90] sm:$0xff] }
   0x8   :  { %312 = vmatprep.subr.bf16.mxu1 %v311_v18  ;;  %v38_v29 = vld [vmem:[%s496_s0 + $0xb8] sm:$0xff]  ;;  %v35_v32 = vld [vmem:[%s496_s0 + $0xa0] sm:$0xff]  ;;  %v37_v34 = vld [vmem:[%s496_s0 + $0xb0] sm:$0xff] }
   0x9   :  { %v315_v31 = vpack.c.bf16 %v38_v29, %v34_v28  ;;  %v305_v35 = vpack.c.bf16 %v35_v32, %v31_v30  ;;  %v317_v36 = vpack.c.bf16 %v37_v34, %v33_v33  ;;  %v40_v37 = vld [vmem:[%s496_s0 + $0xc8] sm:$0x1f]  ;;  %v42_v38 = vld [vmem:[%s496_s0 + $0xd8] sm:$0x1f]  ;;  %v39_v39 = vld [vmem:[%s496_s0 + $0xc0] sm:$0x1f] }
   0xa   :  { %302 = vmatpush1.bf16.msra.mxu0 %v301_v22  ;;  %v41_v40 = vld [vmem:[%s496_s0 + $0xd0] sm:$0x1f]  ;;  %v11_v41 = vld [vmem:[%s497_s1] sm:$0xff]  ;;  %v12_v42 = vld [vmem:[%s497_s1 + $0x8] sm:$0xff] }
   0xb   :  { %314 = vmatpush1.bf16.msra.mxu1 %v313_v26  ;;  %304 = vmatprep.subr.bf16.mxu0 %v303_v27  ;;  %v13_v43 = vld [vmem:[%s497_s1 + $0x10] sm:$0xff]  ;;  %v14_v44 = vld [vmem:[%s497_s1 + $0x18] sm:$0xff] }
   0xc   :  { %316 = vmatprep.subr.bf16.mxu1 %v315_v31 }
   0xe   :  { %306 = vmatpush1.bf16.msra.mxu0 %v305_v35 }
   0xf   :  { %318 = vmatpush1.bf16.msra.mxu1 %v317_v36  ;;  %283 = vmatprep.subr.msk.mxu0 %vm56_vm0, %v40_v37 }
  0x10   :  { %289 = vmatprep.subr.msk.mxu1 %vm56_vm0, %v42_v38 }
  0x12   :  { %284 = vmatpush1.msk.msra.mxu0 %vm56_vm0, %v39_v39 }
  0x13   :  { %290 = vmatpush1.msk.msra.mxu1 %vm56_vm0, %v41_v40  ;;  %285 = vmatmul.mubr.msk.f32.vlgmr.msra.gmra.mrb[0].mxu0 %vm43_vm1, %v11_v41 }
  0x14   :  { %291 = vmatmul.mubr.msk.f32.vlgmr.msra.gmra.mrb[0].mxu1 %vm43_vm1, %v11_v41  ;;  %139 = vmatprep.mubr.f32.mxu0 %v320_v3 }
  0x15   :  { %228 = vmatprep.mubr.f32.mxu1 %v320_v3 }
  0x17   :  { %286 = vmatmul.mubr.msk.f32.gmra.mrb[2].mxu0 %vm43_vm1, %v12_v42 }
  0x18   :  { %292 = vmatmul.mubr.msk.f32.gmra.mrb[2].mxu1 %vm43_vm1, %v12_v42  ;;  %145 = vmatprep.mubr.f32.mxu0 %v320_v3 }
  0x19   :  { %234 = vmatprep.mubr.f32.mxu1 %v320_v3 }
  0x1b   :  { %287 = vmatmul.mubr.msk.f32.gmra.mrb[4].mxu0 %vm43_vm1, %v13_v43 }
  0x1c   :  { %293 = vmatmul.mubr.msk.f32.gmra.mrb[4].mxu1 %vm43_vm1, %v13_v43  ;;  %151 = vmatprep.mubr.f32.mxu0 %v320_v3 }
  0x1d   :  { %240 = vmatprep.mubr.f32.mxu1 %v320_v3 }
  0x1f   :  { %288 = vmatmul.mubr.msk.f32.gmra.mrb[6].mxu0 %vm43_vm1, %v14_v44 }
  0x20   :  { %294 = vmatmul.mubr.msk.f32.gmra.mrb[6].mxu1 %vm43_vm1, %v14_v44 }
  0xe6   :  { %v135_v45 = vpop.f32.mrb[0].mxu0 }
  0xe7   :  { %v247_v46 = vmax.f32 %v135_v45, 0.0  ;;  %v224_v47 = vpop.f32.mrb[0].mxu1  ;;  %v137_v48 = vpop.f32.mrb[1].mxu0 }
  0xe8   :  { %v249_v49 = vmax.f32 %v224_v47, 0.0  ;;  %v248_v50 = vmax.f32 %v137_v48, 0.0  ;;  %v226_v51 = vpop.f32.mrb[1].mxu1 }
  0xe9   :  { %263 = vst [vmem:[%s498_s2] sm:$0xff] %v247_v46  ;;  %v250_v52 = vmax.f32 %v226_v51, 0.0 }
  0xea   :  { %265 = vst [vmem:[%s498_s2 + $0x10] sm:$0xff] %v249_v49  ;;  %264 = vst [vmem:[%s498_s2 + $0x8] sm:$0xff] %v248_v50  ;;  %v141_v53 = vpop.f32.mrb[2].mxu0 }
  0xeb   :  { %266 = vst [vmem:[%s498_s2 + $0x18] sm:$0xff] %v250_v52  ;;  %v251_v54 = vmax.f32 %v141_v53, 0.0  ;;  %v230_v55 = vpop.f32.mrb[2].mxu1  ;;  %v143_v56 = vpop.f32.mrb[3].mxu0 }
  0xec   :  { %v253_v57 = vmax.f32 %v230_v55, 0.0  ;;  %v252_v58 = vmax.f32 %v143_v56, 0.0  ;;  %v232_v59 = vpop.f32.mrb[3].mxu1 }
  0xed   :  { %267 = vst [vmem:[%s498_s2 + $0x20] sm:$0xff] %v251_v54  ;;  %v254_v60 = vmax.f32 %v232_v59, 0.0 }
  0xee   :  { %269 = vst [vmem:[%s498_s2 + $0x30] sm:$0xff] %v253_v57  ;;  %268 = vst [vmem:[%s498_s2 + $0x28] sm:$0xff] %v252_v58  ;;  %v147_v61 = vpop.f32.mrb[4].mxu0 }
  0xef   :  { %270 = vst [vmem:[%s498_s2 + $0x38] sm:$0xff] %v254_v60  ;;  %v255_v62 = vmax.f32 %v147_v61, 0.0  ;;  %v236_v63 = vpop.f32.mrb[4].mxu1  ;;  %v149_v0 = vpop.f32.mrb[5].mxu0 }
  0xf0   :  { %v257_v1 = vmax.f32 %v236_v63, 0.0  ;;  %v256_v2 = vmax.f32 %v149_v0, 0.0  ;;  %v238_v3 = vpop.f32.mrb[5].mxu1 }
  0xf1   :  { %271 = vst [vmem:[%s498_s2 + $0x40] sm:$0xff] %v255_v62  ;;  %v258_v4 = vmax.f32 %v238_v3, 0.0 }
  0xf2   :  { %273 = vst [vmem:[%s498_s2 + $0x50] sm:$0xff] %v257_v1  ;;  %272 = vst [vmem:[%s498_s2 + $0x48] sm:$0xff] %v256_v2  ;;  %v153_v5 = vpop.f32.mrb[6].mxu0 }
  0xf3   :  { %274 = vst [vmem:[%s498_s2 + $0x58] sm:$0xff] %v258_v4  ;;  %v259_v6 = vmax.f32 %v153_v5, 0.0  ;;  %v242_v7 = vpop.f32.mrb[6].mxu1  ;;  %v155_v8 = vpop.f32.mrb[7].mxu0 }
  0xf4   :  { %v261_v9 = vmax.f32 %v242_v7, 0.0  ;;  %v260_v10 = vmax.f32 %v155_v8, 0.0  ;;  %v244_v11 = vpop.f32.mrb[7].mxu1 }
  0xf5   :  { %275 = vst [vmem:[%s498_s2 + $0x60] sm:$0xff] %v259_v6  ;;  %v262_v12 = vmax.f32 %v244_v11, 0.0 }
  0xf6   :  { %277 = vst [vmem:[%s498_s2 + $0x70] sm:$0xff] %v261_v9  ;;  %276 = vst [vmem:[%s498_s2 + $0x68] sm:$0xff] %v260_v10 }
  0xf7   :  { %278 = vst [vmem:[%s498_s2 + $0x78] sm:$0xff] %v262_v12 }

</bundles_post_ra>
